<compile_context>
chip_gen: v7x
topology: tpu7x:2x2x1
jax: 0.10.0
libtpu: 0.0.40
codegen_flags: <defaults>
</compile_context>

<pallas_src>
import jax
import jax.numpy as jnp
from jax.experimental import pallas as pl
from jax.experimental.pallas import tpu as pltpu


def _sigmoid(x):
    # Exact sigmoid in f32 (the gate is tiny; keep bit-level parity with ref).
    return 1.0 / (1.0 + jnp.exp(-x))


# ----------------------------------------------------------------------------
# Kernels: one grid step processes nb images.  The squeeze/excite is done once
# for the whole block; the gate is stored lane-dense as (nb, 1, C).
# ----------------------------------------------------------------------------
def _se_kernel_chw(x_ref, w1t_ref, w2t_ref, out_ref, gate_ref):
    """Slab layout (nb, C, HW): HW on the lane axis (NCHW callers)."""
    _, _, hw = x_ref.shape
    x = x_ref[...]                                                 # (nb, C, HW)
    # Global average pool over HW (lane axis), f32 accumulation -> (nb, C).
    s = jnp.sum(x, axis=2, dtype=jnp.float32) * (1.0 / hw)
    # fc1 + ReLU: (nb, C) @ (C, Cr) -> (nb, Cr).
    h = jnp.maximum(
        jnp.dot(s, w1t_ref[...], preferred_element_type=jnp.float32), 0.0)
    # fc2 + sigmoid: (nb, Cr) @ (Cr, C) -> (nb, C), lane-dense.  Computed ONCE.
    g = _sigmoid(jnp.dot(h, w2t_ref[...], preferred_element_type=jnp.float32))
    g = g.astype(out_ref.dtype)                                    # cast once
    gate_ref[...] = g[:, None, :]                                  # (nb, 1, C)
    # Block-wide broadcast multiply over the HW lane axis (tiny gate relayout
    # goes through the otherwise-idle XLU).
    out_ref[...] = x * g[:, :, None]


def _se_kernel_hwc(x_ref, w1t_ref, w2t_ref, out_ref, gate_ref):
    """Slab layout (nb, HW, C): C on the lane axis (channels-last callers)."""
    _, hw, _ = x_ref.shape
    x = x_ref[...]                                                 # (nb, HW, C)
    # Pool over HW (sublane axis) -> (nb, C) lane-dense, f32 accumulation.
    s = jnp.sum(x, axis=1, dtype=jnp.float32) * (1.0 / hw)
    h = jnp.maximum(
        jnp.dot(s, w1t_ref[...], preferred_element_type=jnp.float32), 0.0)
    g = _sigmoid(jnp.dot(h, w2t_ref[...], preferred_element_type=jnp.float32))
    g = g.astype(out_ref.dtype)                                    # cast once
    gate_ref[...] = g[:, None, :]                                  # (nb, 1, C)
    out_ref[...] = x * g[:, None, :]                 # free sublane broadcast


# ----------------------------------------------------------------------------
# Host-side helpers.
# ----------------------------------------------------------------------------
def _vmem_budget():
    """(target slab bytes, vmem_limit cap) derived from the chip generation."""
    try:
        cap = int(pltpu.get_tpu_info().vmem_capacity_bytes)
    except Exception:
        cap = 64 * 1024 * 1024            # conservative fallback (v7x per-TC)
    target_slab = max(2 * 1024 * 1024, cap // 8)   # ~8 MiB v7x, ~16 MiB v6e/v5e
    vmem_cap = (cap * 3) // 4                      # headroom for Mosaic scratch
    return target_slab, vmem_cap


def _pick_block_batch(n, per_image_bytes, target_bytes):
    """Largest divisor nb of n with nb*per_image_bytes <= target_bytes,
    preferring an even (and >= 2) grid-step count so both v7x TCs get work."""
    divisors = [d for d in range(1, n + 1) if n % d == 0]
    fitting = [d for d in divisors if d * per_image_bytes <= target_bytes] or [1]
    even = [d for d in fitting if (n // d) % 2 == 0]
    return max(even) if even else max(fitting)


def se_module_naive(x, w1, w2, *, data_format="NCHW", block_batch=None):
    """Squeeze-and-Excitation forward.

    x: (N, C, H, W) if data_format == "NCHW" (matches the PyTorch module), or
       (N, H, W, C) if data_format == "NHWC" (channels-last callers; no
       wrapper transposes are inserted in either case).
    w1: (C//r, C) fc1 weight.  w2: (C, C//r) fc2 weight.
    Returns (x * gate, gate) with the output in the input layout and the gate
    as (N, C, 1, 1), matching the PyTorch module.
    """
    if data_format == "NCHW":
        N, C, H, W = x.shape
    elif data_format == "NHWC":
        N, H, W, C = x.shape
    else:
        raise ValueError("data_format must be 'NCHW' or 'NHWC'")
    Cr = w1.shape[0]
    HW = H * W
    itemsize = jnp.dtype(x.dtype).itemsize

    target_slab, vmem_cap = _vmem_budget()
    per_image_bytes = C * HW * itemsize
    nb = (block_batch if block_batch is not None
          else _pick_block_batch(N, per_image_bytes, target_slab))
    assert N % nb == 0, "block_batch must divide N"

    # Pre-transpose the (tiny) weights once in XLA so the kernel runs plain
    # row-major matmuls.
    w1t = jnp.transpose(w1)   # (C, Cr)
    w2t = jnp.transpose(w2)   # (Cr, C)

    if data_format == "NHWC":
        x3 = x.reshape(N, HW, C)        # zero-copy reshape
        kernel = _se_kernel_hwc
        slab = (nb, HW, C)
    else:
        x3 = x.reshape(N, C, HW)        # zero-copy reshape
        kernel = _se_kernel_chw
        slab = (nb, C, HW)

    block_bytes = nb * per_image_bytes
    # Double-buffered input + output blocks dominate; keep headroom below the
    # generation's physical VMEM.
    vmem_limit = int(min(vmem_cap, max(32 * 1024 * 1024, 6 * block_bytes)))

    # Memory-bound op: read x once, write out once, plus the tiny gate/weights.
    cost = pl.CostEstimate(
        flops=2 * N * C * HW + 4 * N * C * Cr,
        transcendentals=N * C,
        bytes_accessed=(2 * N * C * HW * itemsize + N * C * itemsize
                        + 2 * C * Cr * 4),
    )

    out3, gate3 = pl.pallas_call(
        kernel,
        out_shape=(
            jax.ShapeDtypeStruct(x3.shape, x.dtype),
            jax.ShapeDtypeStruct((N, 1, C), x.dtype),   # lane-dense gate
        ),
        grid_spec=pltpu.PrefetchScalarGridSpec(
            num_scalar_prefetch=0,
            grid=(N // nb,),
            in_specs=[
                pl.BlockSpec(slab, lambda n: (n, 0, 0)),
                pl.BlockSpec((C, Cr), lambda n: (0, 0)),
                pl.BlockSpec((Cr, C), lambda n: (0, 0)),
            ],
            out_specs=[
                pl.BlockSpec(slab, lambda n: (n, 0, 0)),
                pl.BlockSpec((nb, 1, C), lambda n: (n, 0, 0)),
            ],
        ),
        compiler_params=pltpu.CompilerParams(
            dimension_semantics=("parallel",),
            vmem_limit_bytes=vmem_limit,
        ),
        cost_estimate=cost,
    )(x3, w1t, w2t)

    gate = gate3.reshape(N, C, 1, 1)    # pure reshape, no data movement
    if data_format == "NHWC":
        out = out3.reshape(N, H, W, C)
    else:
        out = out3.reshape(N, C, H, W)
    return out, gate


def _reference(x, w1, w2):
    s = jnp.mean(x, axis=(2, 3), keepdims=True)                    # (N,C,1,1)
    h = jnp.einsum("oc,nchw->nohw", w1, s)                         # (N,Cr,1,1)
    h = jnp.maximum(h, 0.0)
    g = jnp.einsum("oc,nchw->nohw", w2, h)                         # (N,C,1,1)
    g = jax.nn.sigmoid(g)
    return x * g, g


if __name__ == "__main__":
    key = jax.random.PRNGKey(0)
    N, C, H, W = 2, 4, 16, 16
    reduction = 2
    Cr = C // reduction

    kx, k1, k2 = jax.random.split(key, 3)
    x = jax.random.normal(kx, (N, C, H, W), dtype=jnp.float32)

    # fc1: xavier_uniform for a (Cr, C, 1, 1) conv weight -> (Cr, C) matrix.
    bound = (6.0 / (C + Cr)) ** 0.5
    w1 = jax.random.uniform(k1, (Cr, C), jnp.float32, -bound, bound)
    w2 = jax.random.uniform(k2, (C, Cr), jnp.float32, -bound, bound)

    ref_out, ref_gate = _reference(x, w1, w2)

    # Default NCHW path (no wrapper transposes), one batched SE per grid step.
    out, gate = se_module_naive(x, w1, w2)
    jax.block_until_ready((out, gate))
    assert out.shape == (N, C, H, W) and gate.shape == (N, C, 1, 1)
    assert jnp.allclose(out, ref_out, atol=1e-5, rtol=1e-5)
    assert jnp.allclose(gate, ref_gate, atol=1e-5, rtol=1e-5)

    # Channels-last path for callers whose activations are already NHWC
    # (the transpose below is test-only, not part of the op).
    x_nhwc = jnp.transpose(x, (0, 2, 3, 1))
    out_nhwc, gate2 = se_module_naive(x_nhwc, w1, w2, data_format="NHWC")
    jax.block_until_ready((out_nhwc, gate2))
    out2 = jnp.transpose(out_nhwc, (0, 3, 1, 2))
    assert jnp.allclose(out2, ref_out, atol=1e-5, rtol=1e-5)
    assert jnp.allclose(gate2, ref_gate, atol=1e-5, rtol=1e-5)

    # Explicit block_batch (single grid step covering both images).
    out3, gate3 = se_module_naive(x, w1, w2, block_batch=2)
    jax.block_until_ready((out3, gate3))
    assert jnp.allclose(out3, ref_out, atol=1e-5, rtol=1e-5)
    assert jnp.allclose(gate3, ref_gate, atol=1e-5, rtol=1e-5)

    print("KERNEL_OK")
</pallas_src>

<mosaic_0001>
module attributes {stable_mosaic.version = 11 : i64} {
  func.func @_se_kernel_chw(%arg0: i32, %arg1: memref<1x4x256xf32, #tpu.memory_space<vmem>>, %arg2: memref<4x2xf32, #tpu.memory_space<vmem>>, %arg3: memref<2x4xf32, #tpu.memory_space<vmem>>, %arg4: memref<1x4x256xf32, #tpu.memory_space<vmem>>, %arg5: memref<1x1x4xf32, #tpu.memory_space<vmem>>) attributes {dimension_semantics = [#tpu.dimension_semantics<parallel>], iteration_bounds = array<i64: 2>, scalar_prefetch = 0 : i64, scratch_operands = 0 : i64, tpu.core_type = #tpu.core_type<tc>, window_params = [{transform_indices = @transform_0, window_bounds = array<i64: 1, 4, 256>}, {pipeline_mode = #tpu.pipeline_mode<synchronous>, transform_indices = @transform_1, window_bounds = array<i64: 4, 2>}, {pipeline_mode = #tpu.pipeline_mode<synchronous>, transform_indices = @transform_2, window_bounds = array<i64: 2, 4>}, {transform_indices = @transform_3, window_bounds = array<i64: 1, 4, 256>}, {transform_indices = @transform_4, window_bounds = array<i64: 1, 1, 4>}]} {
    %c0 = arith.constant 0 : index
    %c0_0 = arith.constant 0 : index
    %c0_1 = arith.constant 0 : index
    %0 = vector.load %arg1[%c0, %c0_0, %c0_1] : memref<1x4x256xf32, #tpu.memory_space<vmem>>, vector<1x4x256xf32>
    %cst = arith.constant dense<0.000000e+00> : vector<1x4xf32>
    %1 = vector.multi_reduction <add>, %0, %cst [2] : vector<1x4x256xf32> to vector<1x4xf32>
    %cst_2 = arith.constant 3.906250e-03 : f32
    %2 = vector.broadcast %cst_2 : f32 to vector<1x4xf32>
    %3 = arith.mulf %1, %2 : vector<1x4xf32>
    %c0_3 = arith.constant 0 : index
    %c0_4 = arith.constant 0 : index
    %4 = vector.load %arg2[%c0_3, %c0_4] : memref<4x2xf32, #tpu.memory_space<vmem>>, vector<4x2xf32>
    %cst_5 = arith.constant dense<0.000000e+00> : vector<1x2xf32>
    %5 = tpu.matmul %3, %4, %cst_5 {dimension_numbers = #tpu.dot_dimension_numbers<[1], [0], [0], [1], [0, 0, 1, 1], [], []>} : vector<1x4xf32>, vector<4x2xf32>, vector<1x2xf32> -> vector<1x2xf32>
    %cst_6 = arith.constant 0.000000e+00 : f32
    %6 = vector.broadcast %cst_6 : f32 to vector<1x2xf32>
    %7 = arith.maximumf %5, %6 : vector<1x2xf32>
    %c0_7 = arith.constant 0 : index
    %c0_8 = arith.constant 0 : index
    %8 = vector.load %arg3[%c0_7, %c0_8] : memref<2x4xf32, #tpu.memory_space<vmem>>, vector<2x4xf32>
    %cst_9 = arith.constant dense<0.000000e+00> : vector<1x4xf32>
    %9 = tpu.matmul %7, %8, %cst_9 {dimension_numbers = #tpu.dot_dimension_numbers<[1], [0], [0], [1], [0, 0, 1, 1], [], []>} : vector<1x2xf32>, vector<2x4xf32>, vector<1x4xf32> -> vector<1x4xf32>
    %cst_10 = arith.constant 0.000000e+00 : f32
    %10 = vector.broadcast %cst_10 : f32 to vector<1x4xf32>
    %11 = arith.subf %10, %9 : vector<1x4xf32>
    %12 = math.exp %11 : vector<1x4xf32>
    %cst_11 = arith.constant 1.000000e+00 : f32
    %13 = vector.broadcast %cst_11 : f32 to vector<1x4xf32>
    %14 = arith.addf %13, %12 : vector<1x4xf32>
    %cst_12 = arith.constant 1.000000e+00 : f32
    %15 = vector.broadcast %cst_12 : f32 to vector<1x4xf32>
    %16 = arith.divf %15, %14 : vector<1x4xf32>
    %17 = vector.shape_cast %16 : vector<1x4xf32> to vector<1x1x4xf32>
    %c0_13 = arith.constant 0 : index
    %c0_14 = arith.constant 0 : index
    %c0_15 = arith.constant 0 : index
    %18 = vector.load %arg5[%c0_13, %c0_14, %c0_15] : memref<1x1x4xf32, #tpu.memory_space<vmem>>, vector<1x1x4xf32>
    tpu.vector_store %arg5[%c0_13, %c0_14, %c0_15], %17 {strides = array<i32>} : memref<1x1x4xf32, #tpu.memory_space<vmem>>, vector<1x1x4xf32>,
    %19 = vector.shape_cast %16 : vector<1x4xf32> to vector<1x4x1xf32>
    %20 = vector.broadcast %19 : vector<1x4x1xf32> to vector<1x4x256xf32>
    %21 = arith.mulf %0, %20 : vector<1x4x256xf32>
    %c0_16 = arith.constant 0 : index
    %c0_17 = arith.constant 0 : index
    %c0_18 = arith.constant 0 : index
    %22 = vector.load %arg4[%c0_16, %c0_17, %c0_18] : memref<1x4x256xf32, #tpu.memory_space<vmem>>, vector<1x4x256xf32>
    tpu.vector_store %arg4[%c0_16, %c0_17, %c0_18], %21 {strides = array<i32>} : memref<1x4x256xf32, #tpu.memory_space<vmem>>, vector<1x4x256xf32>,
    return
  }
  func.func @transform_0(%arg0: i32) -> (i32, i32, i32) {
    %c0_i32 = arith.constant 0 : i32
    %c0_i32_0 = arith.constant 0 : i32
    %c0_i32_1 = arith.constant 0 : i32
    return %arg0, %c0_i32, %c0_i32_0 : i32, i32, i32
  }
  func.func @transform_1(%arg0: i32) -> (i32, i32) {
    %c0_i32 = arith.constant 0 : i32
    %c0_i32_0 = arith.constant 0 : i32
    %c0_i32_1 = arith.constant 0 : i32
    return %c0_i32, %c0_i32_0 : i32, i32
  }
  func.func @transform_2(%arg0: i32) -> (i32, i32) {
    %c0_i32 = arith.constant 0 : i32
    %c0_i32_0 = arith.constant 0 : i32
    %c0_i32_1 = arith.constant 0 : i32
    return %c0_i32, %c0_i32_0 : i32, i32
  }
  func.func @transform_3(%arg0: i32) -> (i32, i32, i32) {
    %c0_i32 = arith.constant 0 : i32
    %c0_i32_0 = arith.constant 0 : i32
    %c0_i32_1 = arith.constant 0 : i32
    return %arg0, %c0_i32, %c0_i32_0 : i32, i32, i32
  }
  func.func @transform_4(%arg0: i32) -> (i32, i32, i32) {
    %c0_i32 = arith.constant 0 : i32
    %c0_i32_0 = arith.constant 0 : i32
    %c0_i32_1 = arith.constant 0 : i32
    return %arg0, %c0_i32, %c0_i32_0 : i32, i32, i32
  }
}

</mosaic_0001>

<bundles_post_ra>
// kernel: tpu_custom_call.1
= control target key start
LH: loop header
LB: loop body
LE: loop exit
PB: predicated region body
PF: predicated region fallthrough
CT: control target
= control target key end

     0   :  { %10 = vsyncpa [#allocation3], 0  ;;  %s1023_s0 = inlined_call_operand.hbm [shape: f32[2,4,256], index: 0, kind: input, shape index: {}]   ;;  %s1024_s1 = inlined_call_operand.vmem [shape: f32[4,2], index: 1, kind: input, shape index: {}]   ;;  %s1025_s2 = inlined_call_operand.vmem [shape: f32[2,4], index: 2, kind: input, shape index: {}]   ;;  %s1026_s3 = inlined_call_operand.hbm [shape: f32[2,4,256], index: 3, kind: output, shape index: {0}]   ;;  %s1027_s4 = inlined_call_operand.hbm [shape: f32[2,1,4], index: 4, kind: output, shape index: {1}]  }
   0x1   :  { %12 = vsyncpa [#allocation3 + $0x1], 0 }
   0x2   :  { %13 = vsyncpa [#allocation4], 0 }
   0x3   :  { %15 = vsyncpa [#allocation4 + $0x1], 0 }
   0x4   :  { %16 = vsyncpa [#allocation7], 0 }
   0x5   :  { %18 = vsyncpa [#allocation7 + $0x1], 0  ;;  %s810_s15 = smov 0   ;;  %s812_s16 = smov 0  }
   0x6   :  { %s814_s17 = smov 0   ;;  %s816_s18 = smov 0  }
   0x7 LB: > { %s831_s19 = sadd.s32 4294967295, %s777_s18   ;;  %s555_s20 = sadd.s32 4294967294, %s777_s18   ;;  %s777_s18 = sphi %s816_s18, %s1042_s18   ;;  %s773_s17 = sphi %s814_s17, %s1041_s17   ;;  %s769_s16 = sphi %s812_s16, %s1040_s16   ;;  %s765_s15 = sphi %s810_s15, %s1039_s15  }
   0x8   : > { %s835_s21 = sadd.s32 1, %s777_s18   ;;  %s31_s22 = sadd.s32 1, %s773_s17 }
   0x9   : > { %s28_s23 = ssub.s32 %s777_s18, %s835_s21  ;;  %p38_p0 = scmp.ne.s32.totalorder %s773_s17, %s769_s16 }
   0xa   : > { %p29_p1 = scmp.eq.s32.totalorder %s28_s23, 0  ;;  %p39_p2 = scmp.eq.s32.totalorder %s777_s18, 0 }
   0xb   : > { %p44_p3 = scmp.ne.s32.totalorder %s769_s16, %s765_s15  ;;  %p45_p4 = scmp.eq.s32.totalorder %s831_s19, 0 }
   0xc   : > { %s847_s24 = scalar_select %p29_p1, %s773_s17, %s31_s22  }
   0xd   : > { %p849_p5 = por %p39_p2, %p38_p0  ;;  %p853_p6 = por %p45_p4, %p44_p3 }
   0xe   : > { %p110_p7 = scmp.eq.s32.totalorder %s831_s19, 1  ;;  %p116_p8 = scmp.eq.s32.totalorder %s555_s20, 1 }
   0xf   : > { %p607_p10 = scmp.lt.s32.totalorder %s777_s18, 2  ;;  %s168_s29 = sand.u32 1, %s773_s17  }
  0x10   : > { %p860_p11 = por %p110_p7, %p38_p0  ;;  %p864_p12 = por %p116_p8, %p44_p3 }
  0x11   : > { %s574_s30 = sshll.u32 %s777_s18, 7  ;;  %s558_s5 = sshll.u32 %s168_s29, 3 }
  0x12   : > { %s1031_s27 = scalar_select %p860_p11, 1, 0 }
  0x13   : > { %s1032_s28 = scalar_select %p864_p12, 1, 0 }
  0x14   : > { %s873_s8 = scalar_lea.hbm %s1023_s0, %s574_s30  ;;  %s172_s9 = scalar_lea.vmem [#allocation2], %s558_s5 }
  0x15   : > { %s180_s10 = sshll.u32 %s172_s9, 4  ;;  %p877_p13 = pnand %p607_p10, %p849_p5  ;;  %s881_s10 = int_to_ptr.vmem [resolvable:$true] %s180_s10 }
  0x16   : > { %s169_s12 = scalar_lea.sflag [#allocation3], %s168_s29  ;;  %s649_s13 = scalar_lea.hbm %s873_s8, 128 }
  0x17   : > { %p650_p2 = scmp.ne.s32.totalorder %s873_s8, %s649_s13  ;;  %p651_p3 = pneg %p877_p13 }
  0x18   : > { %s654_s22 = scalar_lea.hbm %s1023_s0, 256  ;;  %p655_p5 = scmp.lt.u32.totalorder %s873_s8, %s1023_s0 }
  0x19   : > { %p652_p4 = pnand %p651_p3, %p650_p2  ;;  %p656_p8 = scmp.lt.u32.totalorder %s654_s22, %s649_s13 }
  0x1a   : > { %p658_p9 = scmp.lt.u32.totalorder %s649_s13, %s873_s8 }
  0x1b   : > { %p653_p7 = pneg %p652_p4  ;;  %p657_p10 = por %p656_p8, %p655_p5 }
  0x1d   : > { %p659_p0 = por %p658_p9, %p657_p10 }
  0x1f   : > { %p660_p1 = pnand %p659_p0, %p653_p7 }
  0x21   : > { %663 = shalt.err (!%p660_p1)
}
  0x22   : > { %s664_s29 = scalar_lea.vmem %s881_s10, 128  ;;  %s779_s30 = smov [#allocation2]  }
  0x23   : > { %p665_p2 = scmp.ne.s32.totalorder %s881_s10, %s664_s29  ;;  %s669_s5 = sshll.u32 %s779_s30, 4  ;;  %s670_s5 = int_to_ptr.vmem [resolvable:$false] %s669_s5 }
  0x24   : > { %s671_s6 = scalar_lea.vmem %s670_s5, 256  ;;  %p672_p11 = scmp.lt.s32.totalorder %s881_s10, %s670_s5 }
  0x25   : > { %p667_p4 = pnand %p665_p2, %p651_p3  ;;  %p673_p5 = scmp.lt.s32.totalorder %s671_s6, %s664_s29 }
  0x27   : > { %p668_p12 = pneg %p667_p4  ;;  %p674_p8 = por %p673_p5, %p672_p11 }
  0x29   : > { %p675_p9 = pnand %p674_p8, %p668_p12 }
  0x2b   : > { %678 = shalt.err (!%p675_p9)
}
  0x2c   : > { %599 = dma.hbm_to_vmem [thread:$0]  (!%p877_p13), %s873_s8, 128, %s881_s10, %s169_s12  }
  0x2d   : > { %p1034_p0 = scmp.lt.s32.totalorder %s777_s18, 3  ;;  %p1035_p1 = scmp.ge.s32.totalorder %s777_s18, 1 }
  0x2f   : > { %p186_p3 = pnand %p1035_p1, %p1034_p0 }
  0x30   : > { %s915_s7 = sand.u32 (!%p186_p3), 1, %s769_s16  }
  0x31   : > { %189 = sbr.rel (%p186_p3) target bundleno = 809 (0x329), region = 32  ;;  %s562_s9 = sshll.u32 (!%p186_p3), %s915_s7, 3 }
  0x32   : > { %s192_s13 = scalar_lea.sflag (!%p186_p3), [#allocation3], %s915_s7  ;;  %s195_s11 = scalar_lea.vmem (!%p186_p3), [#allocation2], %s562_s9 }
  0x38   : > { %752 = dma.done.wait (%p853_p6), %s192_s13, 128  }
  0x39   : > { %754 = vsyncadd (%p853_p6), %s192_s13, 4294967168  ;;  %vm228_vm0 = vcmask 1043456   ;;  %v925_v0 = vld [vmem:[%s195_s11] sm:$0xff]  ;;  %v780_v5 = vmov 0.0   ;;  %vm781_vm1 = vmmov 0   ;;  %v237_v7 = vlaneseq  ;;  %s571_s14 = sshll.u32 %s831_s19, 4 }
  0x3a   : > { %v226_v1 = vcombine.high %v925_v0, %v925_v0  ;;  %v229_v2 = vsel %vm228_vm0, %v925_v0, 0.0  ;;  %580 = vmatprep.subr.mxu0 %v780_v5  ;;  %v235_v6 = vld [vmem:[%s1024_s1] sm:$0xf]  ;;  %585 = vmatprep.subr.mxu1 %v780_v5  ;;  %vm243_vm2 = vcmask 31744   ;;  %vm325_vm3 = vcmask 1041408   ;;  %s223_s20 = scalar_lea.vmem [#allocation6], %s915_s7  ;;  %s945_s29 = scalar_lea.hbm %s1027_s4, %s571_s14 }
  0x3b   : > { %581 = vmatpush3.msk.msra.mxu0 %vm228_vm0, %v235_v6  ;;  %582 = vmatprep.mubr.msk.f32.mxu0 %vm781_vm1, %v780_v5  ;;  %v238_v8 = vand.u32 127, %v237_v7  ;;  %v933_v9 = vshrl.u32 %v237_v7, 7  ;;  %v320_v14 = vld [vmem:[%s1025_s2] sm:$0x3]  ;;  %vm321_vm4 = vcmask 15360   ;;  %s457_s22 = sshll.u32 %s223_s20, 4  ;;  %s947_s22 = int_to_ptr.vmem [resolvable:$true] %s457_s22 }
  0x3c   : > { %v230_v3 = vsel %vm228_vm0, %v226_v1, 0.0  ;;  %587 = vmatprep.mubr.msk.f32.mxu1 %vm781_vm1, %v780_v5  ;;  %586 = vmatpush3.msk.msra.mxu1 %vm325_vm3, %v320_v14  ;;  %vm405_vm5 = vcmask 24576   ;;  %s431_s30 = scalar_lea.sflag [#allocation7], %s915_s7  ;;  %s679_s5 = scalar_lea.vmem %s947_s22, 16 }
  0x3d   : > { %v231_v4 = vadd.f32 %v230_v3, %v229_v2  ;;  %v241_v10 = vsub.s32 %v238_v8, %v933_v9  ;;  %v409_v24 = vsub.s32 0, %v933_v9  ;;  %p680_p6 = scmp.ne.s32.totalorder %s947_s22, %s679_s5  ;;  %p1036_p11 = scmp.ne.s32.totalorder %s1031_s27, 0 }
  0x3e   : > { %s782_s6 = smov [#allocation6]  }
  0x3f   : > { %232 = vadd.xlane.f32.xlu0 %v231_v4  ;;  %p681_p12 = pnand %p680_p6, %p1036_p11  ;;  %s683_s13 = sshll.u32 %s782_s6, 4  ;;  %s684_s13 = int_to_ptr.vmem [resolvable:$false] %s683_s13 }
  0x40   : > { %s685_s11 = scalar_lea.vmem %s684_s13, 32  ;;  %p686_p7 = scmp.lt.s32.totalorder %s947_s22, %s684_s13 }
  0x41   : > { %p682_p13 = pneg %p681_p12  ;;  %p687_p10 = scmp.lt.s32.totalorder %s685_s11, %s679_s5 }
  0x43   : > { %p688_p2 = por %p687_p10, %p686_p7 }
  0x45   : > { %p689_p4 = pnand %p688_p2, %p682_p13 }
  0xcc   : > { %v233_v11 = vpop.xlane.xlu0 %232 }
  0xcd   : > { %v234_v12 = vmul.f32 0.00390625, %v233_v11 }
  0xcf   : > { %v242_v13 = vrot.slane %v234_v12, %v241_v10 }
  0xd1   : > { %583 = vmatmul.mubr.msk.f32.vlgmr.msra.gmra.mrb[0].mxu0 %vm243_vm2, %v242_v13 }
 0x1a4   : > { %v315_v15 = vpop.f32.mrb[0].mxu0 }
 0x1a5   : > { %v319_v16 = vmax.f32 %v315_v15, 0.0  ;;  %v584_v17 = vpop.f32.mrb[1].mxu0 }
 0x1a7   : > { %588 = vmatmul.mubr.msk.f32.vlgmr.msra.gmra.mrb[0].mxu1 %vm321_vm4, %v319_v16 }
 0x27a   : > { %v395_v18 = vpop.f32.mrb[0].mxu1 }
 0x27b   : > { %v399_v19 = vsub.f32 0.0, %v395_v18  ;;  %v589_v20 = vpop.f32.mrb[1].mxu1 }
 0x27d   : > { %v400_v21 = vmul.f32 1.442695, %v399_v19 }
 0x27f   : > { %645 = vpow2.f32 %v400_v21 }
 0x289   : > { %v646_v22 = vpop.eup %645 }
 0x28a   : > { %v402_v23 = vadd.f32 1.0, %v646_v22 }
 0x28c   : > { %647 = vrcp.f32 %v402_v23 }
 0x296   : > { %v648_v25 = vpop.eup %647 }
 0x297   : > { %v410_v26 = vrot.slane %v648_v25, %v409_v24  ;;  %406 = vst.msk [vmem:[%s223_s20] sm:$0x1] %vm405_vm5, %v648_v25 }
 0x298   : > { %692 = shalt.err (!%p689_p4)
}
 0x299   : > { %s693_s8 = scalar_lea.hbm %s945_s29, 16  ;;  %s697_s12 = scalar_lea.hbm %s1027_s4, 32 }
 0x29a   : > { %p694_p5 = scmp.ne.s32.totalorder %s945_s29, %s693_s8  ;;  %p698_p0 = scmp.lt.u32.totalorder %s945_s29, %s1027_s4 }
 0x29b   : > { %p699_p1 = scmp.lt.u32.totalorder %s697_s12, %s693_s8  ;;  %p701_p6 = scmp.lt.u32.totalorder %s693_s8, %s945_s29 }
 0x29c   : > { %p695_p8 = pnand %p694_p5, %p1036_p11 }
 0x29d   : > { %p700_p3 = por %p699_p1, %p698_p0 }
 0x29e   : > { %p696_p9 = pneg %p695_p8 }
 0x29f   : > { %p702_p12 = por %p701_p6, %p700_p3 }
 0x2a1   : > { %p703_p13 = pnand %p702_p12, %p696_p9 }
 0x2a3   : > { %706 = shalt.err (!%p703_p13)
}
 0x2a4   : > { %593 = dma.vmem_to_hbm [thread:$0]  (%p1036_p11), %s947_s22, 16, %s945_s29, %s431_s30   ;;  %412 = vbcast.lane.b32.xlu0 %v410_v26, 256  ;;  %v783_v27 = vmov 839922192  }
 0x2a5   : > { %v416_v28 = vunpack.c.l.s4 %v783_v27  ;;  %s575_s23 = sshll.u32 %s831_s19, 7  ;;  %s217_s25 = scalar_lea.vmem [#allocation5], %s562_s9 }
 0x2a6   : > { %s444_s5 = sshll.u32 %s217_s25, 4  ;;  %s979_s11 = scalar_lea.hbm %s1026_s3, %s575_s23  ;;  %s981_s5 = int_to_ptr.vmem [resolvable:$true] %s444_s5 }
 0x2a7   : > { %v417_v29 = vunpack.c.0.s8 %v416_v28  ;;  %s426_s22 = scalar_lea.sflag [#allocation4], %s915_s7  ;;  %s707_s29 = scalar_lea.vmem %s981_s5, 128 }
 0x2a8   : > { %p708_p7 = scmp.ne.s32.totalorder %s981_s5, %s707_s29  ;;  %s784_s19 = smov [#allocation5]  }
 0x2a9   : > { %v420_v30 = vsub.s32 %v417_v29, %v933_v9  ;;  %s711_s9 = sshll.u32 %s784_s19, 4  ;;  %s712_s9 = int_to_ptr.vmem [resolvable:$false] %s711_s9 }
 0x2aa   : > { %p709_p10 = pnand %p708_p7, %p1036_p11  ;;  %s713_s30 = scalar_lea.vmem %s712_s9, 256 }
 0x2ab   : > { %p714_p4 = scmp.lt.s32.totalorder %s981_s5, %s712_s9  ;;  %p715_p5 = scmp.lt.s32.totalorder %s713_s30, %s707_s29 }
 0x2ac   : > { %p710_p2 = pneg %p709_p10 }
 0x2ad   : > { %p716_p8 = por %p715_p5, %p714_p4 }
 0x2af   : > { %p717_p9 = pnand %p716_p8, %p710_p2 }
 0x316   : > { %v413_v31 = vpop.permute.xlu0 %412 }
 0x317   : > { %v421_v32 = vrot.slane %v413_v31, %v420_v30 }
 0x319   : > { %v423_v33 = vmul.f32 %v421_v32, %v925_v0 }
 0x31b   : > { %424 = vst [vmem:[%s217_s25] sm:$0xff] %v423_v33 }
 0x31c   : > { %720 = shalt.err (!%p717_p9)
}
 0x31d   : > { %s721_s7 = scalar_lea.hbm %s979_s11, 128  ;;  %s725_s26 = scalar_lea.hbm %s1026_s3, 256 }
 0x31e   : > { %p722_p0 = scmp.ne.s32.totalorder %s979_s11, %s721_s7  ;;  %p726_p6 = scmp.lt.u32.totalorder %s979_s11, %s1026_s3 }
 0x31f   : > { %p727_p12 = scmp.lt.u32.totalorder %s725_s26, %s721_s7  ;;  %p729_p7 = scmp.lt.u32.totalorder %s721_s7, %s979_s11 }
 0x320   : > { %p723_p1 = pnand %p722_p0, %p1036_p11 }
 0x321   : > { %p728_p13 = por %p727_p12, %p726_p6 }
 0x322   : > { %p724_p3 = pneg %p723_p1 }
 0x323   : > { %p730_p10 = por %p729_p7, %p728_p13 }
 0x325   : > { %p731_p2 = pnand %p730_p10, %p724_p3 }
 0x327   : > { %734 = shalt.err (!%p731_p2)
}
 0x328   : > { %592 = dma.vmem_to_hbm [thread:$0]  (%p1036_p11), %s981_s5, 128, %s979_s11, %s426_s22  }
 0x329 PF: > { %s469_s20 = sand.u32 1, %s765_s15   ;;  %p1037_p4 = scmp.ne.s32.totalorder %s1032_s28, 0 }
 0x32a   : > { %p1038_p5 = scmp.ge.s32.totalorder %s777_s18, 2  ;;  %s470_s23 = scalar_lea.sflag [#allocation4], %s469_s20 }
 0x32c   : > { %p601_p8 = pnand %p1038_p5, %p1037_p4 }
 0x32e   : > { %756 = dma.done.wait (!%p601_p8), %s470_s23, 128  }
 0x32f   : > { %758 = vsyncadd (!%p601_p8), %s470_s23, 4294967168  ;;  %s479_s25 = scalar_lea.sflag [#allocation7], %s469_s20 }
 0x330   : > { %760 = dma.done.wait (!%p601_p8), %s479_s25, 16  }
 0x331   : > { %762 = vsyncadd (!%p601_p8), %s479_s25, 4294967280  ;;  %p21_p11 = scmp.ge.s32.totalorder %s835_s21, 4   ;;  %s1039_s15 = smov %s769_s16 }
 0x332   : > { %s1040_s16 = smov %s773_s17  ;;  %s1041_s17 = smov %s847_s24 }
 0x333   : > { %s1042_s18 = smov %s835_s21  ;;  %23 = sbr.rel (!%p21_p11) target bundleno = 7 (0x7), region = 94 }
 0x33a   :  { %483 = vsyncpa [#allocation3], 1 }
 0x33b   :  { %485 = vsyncpa [#allocation3 + $0x1], 1 }
 0x33c   :  { %486 = vsyncpa [#allocation4], 1 }
 0x33d   :  { %488 = vsyncpa [#allocation4 + $0x1], 1 }
 0x33e   :  { %489 = vsyncpa [#allocation7], 1 }
 0x33f   :  { %491 = vsyncpa [#allocation7 + $0x1], 1 }

</bundles_post_ra>
